<compile_context>
chip_gen: v7x
topology: tpu7x:2x2x1
jax: 0.10.0
libtpu: 0.0.40
codegen_flags: <defaults>
</compile_context>

<pallas_src>
import functools
import math

import jax
import jax.numpy as jnp
from jax.experimental import pallas as pl
from jax.experimental.pallas import tpu as pltpu


# ----------------------------------------------------------------------------
# Pallas kernel 1: tiled linear layer  y = x @ W + b  (bf16 MXU, f32 accum)
# ----------------------------------------------------------------------------
def _linear_kernel(x_ref, w_ref, b_ref, o_ref):
    acc = jnp.dot(x_ref[...], w_ref[...], preferred_element_type=jnp.float32)
    o_ref[...] = (acc + b_ref[...]).astype(o_ref.dtype)


def linear_pallas(x, w, b, *, tm=128):
    """x: (M, K) f32, w: (K, N) f32, b: (N,) f32 -> (M, N) f32."""
    M, K = x.shape
    _, n_out = w.shape
    tm = min(tm, max(8, ((M + 7) // 8) * 8))
    m_pad = pl.cdiv(M, tm) * tm
    xp = jnp.pad(x, ((0, m_pad - M), (0, 0))) if m_pad != M else x
    out = pl.pallas_call(
        _linear_kernel,
        out_shape=jax.ShapeDtypeStruct((m_pad, n_out), jnp.float32),
        grid_spec=pltpu.PrefetchScalarGridSpec(
            num_scalar_prefetch=0,
            grid=(m_pad // tm,),
            in_specs=[
                pl.BlockSpec((tm, K), lambda i: (i, 0)),
                pl.BlockSpec((K, n_out), lambda i: (0, 0)),
                pl.BlockSpec((1, n_out), lambda i: (0, 0)),
            ],
            out_specs=pl.BlockSpec((tm, n_out), lambda i: (i, 0)),
        ),
        compiler_params=pltpu.CompilerParams(
            dimension_semantics=("parallel",),
            vmem_limit_bytes=32 * 1024 * 1024),
    )(xp.astype(jnp.bfloat16), w.astype(jnp.bfloat16),
      b.reshape(1, n_out).astype(jnp.float32))
    return out[:M]


# ----------------------------------------------------------------------------
# Pallas kernel 2: deformable bilinear aggregation fused with output_proj.
#
# Per grid cell (batch n, query tile q):
#   - build, per head, the sparse bilinear sampling matrix (TQ, Len_in) in
#     VMEM from the sampling locations + softmaxed attention weights
#     (grid_sample align_corners=False, padding_mode='zeros' semantics),
#   - aggregate against the lane-dense value block on the MXU,
#   - write the head result into its d_head columns of the accumulator,
#   - single full-width output projection + bias at the end.
# ----------------------------------------------------------------------------
def _deform_agg_kernel(value_ref, locx_ref, locy_ref, attn_ref, w_ref, b_ref,
                       o_ref, agg_ref, *, spatial_shapes, level_starts,
                       n_heads, n_points, d_head):
    tq = locx_ref.shape[1]
    len_in = value_ref.shape[1]
    n_levels = len(spatial_shapes)

    col = jax.lax.broadcasted_iota(jnp.int32, (tq, len_in), 1)  # hoisted once

    for h in range(n_heads):
        samp = jnp.zeros((tq, len_in), jnp.float32)
        for l in range(n_levels):
            h_l, w_l = spatial_shapes[l]
            base = (l * n_heads + h) * n_points
            x = locx_ref[0, :, base:base + n_points]        # (tq, P) f32
            y = locy_ref[0, :, base:base + n_points]
            aw = attn_ref[0, :, base:base + n_points]       # softmaxed attn w.
            # grid_sample(align_corners=False) pixel coordinates
            ix = x * w_l - 0.5
            iy = y * h_l - 0.5
            x0 = jnp.floor(ix)
            y0 = jnp.floor(iy)
            lx = ix - x0
            ly = iy - y0
            corners = ((x0, y0, (1.0 - lx) * (1.0 - ly)),
                       (x0 + 1.0, y0, lx * (1.0 - ly)),
                       (x0, y0 + 1.0, (1.0 - lx) * ly),
                       (x0 + 1.0, y0 + 1.0, lx * ly))
            for cx, cy, cw in corners:
                valid = ((cx >= 0.0) & (cx <= w_l - 1.0) &
                         (cy >= 0.0) & (cy <= h_l - 1.0))
                xi = jnp.clip(cx, 0.0, w_l - 1.0)
                yi = jnp.clip(cy, 0.0, h_l - 1.0)
                flat = (yi * w_l + xi + level_starts[l]).astype(jnp.int32)
                wgt = jnp.where(valid, cw, 0.0) * aw         # zeros padding
                for p in range(n_points):
                    samp = samp + jnp.where(col == flat[:, p:p + 1],
                                            wgt[:, p:p + 1], 0.0)
        # per-head aggregation on the MXU: (tq, Len_in) @ (Len_in, d_head)
        v_h = value_ref[0, :, h * d_head:(h + 1) * d_head]   # bf16, lane slice
        head_out = jnp.dot(samp.astype(v_h.dtype), v_h,
                           preferred_element_type=jnp.float32)
        agg_ref[:, h * d_head:(h + 1) * d_head] = head_out

    # ONE full-width output projection: (tq, d_model) @ (d_model, d_model)
    out = jnp.dot(agg_ref[...].astype(jnp.bfloat16), w_ref[...],
                  preferred_element_type=jnp.float32) + b_ref[...]
    o_ref[0] = out.astype(o_ref.dtype)


def deform_agg_output_proj(value_bf16, loc_x, loc_y, attn_w, w_out, b_out, *,
                           spatial_shapes, n_heads, n_points, tq):
    N, len_in, d_model = value_bf16.shape
    _, lq, c = loc_x.shape
    assert lq % tq == 0
    d_head = d_model // n_heads

    level_starts, s = [], 0
    for h_l, w_l in spatial_shapes:
        level_starts.append(s)
        s += h_l * w_l

    kernel = functools.partial(
        _deform_agg_kernel,
        spatial_shapes=tuple(tuple(p) for p in spatial_shapes),
        level_starts=tuple(level_starts),
        n_heads=n_heads, n_points=n_points, d_head=d_head)

    return pl.pallas_call(
        kernel,
        out_shape=jax.ShapeDtypeStruct((N, lq, d_model), jnp.float32),
        grid_spec=pltpu.PrefetchScalarGridSpec(
            num_scalar_prefetch=0,
            grid=(N, lq // tq),
            in_specs=[
                pl.BlockSpec((1, len_in, d_model), lambda n, q: (n, 0, 0)),
                pl.BlockSpec((1, tq, c), lambda n, q: (n, q, 0)),
                pl.BlockSpec((1, tq, c), lambda n, q: (n, q, 0)),
                pl.BlockSpec((1, tq, c), lambda n, q: (n, q, 0)),
                pl.BlockSpec((d_model, d_model), lambda n, q: (0, 0)),
                pl.BlockSpec((1, d_model), lambda n, q: (0, 0)),
            ],
            out_specs=pl.BlockSpec((1, tq, d_model), lambda n, q: (n, q, 0)),
            scratch_shapes=[pltpu.VMEM((tq, d_model), jnp.float32)],
        ),
        compiler_params=pltpu.CompilerParams(
            dimension_semantics=("parallel", "parallel"),
            vmem_limit_bytes=32 * 1024 * 1024),
    )(value_bf16, loc_x, loc_y, attn_w,
      w_out.astype(jnp.bfloat16),
      b_out.reshape(1, d_model).astype(jnp.float32))


# ----------------------------------------------------------------------------
# Forward pass glue (reshapes, softmax, sampling-location arithmetic)
# ----------------------------------------------------------------------------
def ms_deform_offset_attn_forward(params, query, reference_points, input_flatten,
                                  input_spatial_shapes, input_level_start_index,
                                  input_padding_mask=None, *,
                                  n_heads, n_levels, n_points, tq=128):
    del input_level_start_index      # recomputed from the static spatial shapes
    N, len_q, d_model = query.shape
    _, len_in, dim = input_flatten.shape
    assert dim == d_model and d_model % n_heads == 0
    spatial_shapes = [(int(a), int(b)) for a, b in input_spatial_shapes]
    assert sum(h * w for h, w in spatial_shapes) == len_in
    assert len(spatial_shapes) == n_levels

    # --- value projection (Pallas linear) + optional padding mask ---
    value = linear_pallas(input_flatten.reshape(N * len_in, d_model),
                          params["w_value"], params["b_value"]
                          ).reshape(N, len_in, d_model)
    if input_padding_mask is not None:
        value = jnp.where(input_padding_mask[..., None], 0.0, value)

    # --- fused sampling_offsets + attention_weights projection of the query ---
    n_off = n_heads * n_levels * n_points * 2
    w_oa = jnp.concatenate([params["w_offsets"], params["w_attn"]], axis=1)
    b_oa = jnp.concatenate([params["b_offsets"], params["b_attn"]], axis=0)
    oa = linear_pallas(query.reshape(N * len_q, d_model), w_oa, b_oa)
    sampling_offsets = oa[:, :n_off].reshape(
        N, len_q, n_heads, n_levels, n_points, 2)
    attn_logits = oa[:, n_off:].reshape(N, len_q, n_heads, n_levels * n_points)
    attn_w = jax.nn.softmax(attn_logits, axis=-1).reshape(
        N, len_q, n_heads, n_levels, n_points)

    # --- sampling locations (module output) ---
    if reference_points.shape[-1] == 2:
        offset_normalizer = jnp.stack(
            [input_spatial_shapes[:, 1], input_spatial_shapes[:, 0]], -1
        ).astype(jnp.float32)                                   # (L, 2) = (W, H)
        sampling_locations = (
            reference_points[:, :, None, :, None, :]
            + sampling_offsets / offset_normalizer[None, None, None, :, None, :])
    else:
        # TODO(synk): reference_points[..., -1] == 4 branch not implemented.
        raise ValueError("only reference_points[..., -1] == 2 is supported")

    # --- level-major lane-friendly (N, Lq, L*H*P) layouts for the kernel ---
    def level_major(a):                 # (N, Lq, H, L, P) -> (N, Lq, L*H*P)
        return jnp.transpose(a, (0, 1, 3, 2, 4)).reshape(N, len_q, -1)

    loc_x = level_major(sampling_locations[..., 0])
    loc_y = level_major(sampling_locations[..., 1])
    attn_lm = level_major(attn_w)

    # --- pad Len_q up to a multiple of the query tile ---
    tq = min(tq, max(8, ((len_q + 7) // 8) * 8))
    lq_pad = pl.cdiv(len_q, tq) * tq
    if lq_pad != len_q:
        pad = ((0, 0), (0, lq_pad - len_q), (0, 0))
        loc_x, loc_y, attn_lm = [jnp.pad(a, pad) for a in (loc_x, loc_y, attn_lm)]

    output = deform_agg_output_proj(
        value.astype(jnp.bfloat16), loc_x, loc_y, attn_lm,
        params["w_out"], params["b_out"],
        spatial_shapes=spatial_shapes, n_heads=n_heads,
        n_points=n_points, tq=tq)
    return output[:, :len_q], sampling_locations


# ----------------------------------------------------------------------------
# Parameter init mirroring MSDeformOffsetAttn._reset_parameters (has_flow=False)
# ----------------------------------------------------------------------------
def init_params(key, d_model, n_heads, n_levels, n_points):
    kv, ko = jax.random.split(key)
    hlp = n_heads * n_levels * n_points
    thetas = jnp.arange(n_heads, dtype=jnp.float32) * (2.0 * math.pi / n_heads)
    grid_init = jnp.stack([jnp.cos(thetas), jnp.sin(thetas)], -1)       # (H, 2)
    grid_init = grid_init / jnp.max(jnp.abs(grid_init), axis=-1, keepdims=True)
    grid_init = jnp.tile(grid_init[:, None, None, :], (1, n_levels, n_points, 1))
    grid_init = grid_init * jnp.arange(
        1, n_points + 1, dtype=jnp.float32)[None, None, :, None]
    bound = math.sqrt(6.0 / (d_model + d_model))                        # xavier_uniform
    return {
        "w_offsets": jnp.zeros((d_model, hlp * 2), jnp.float32),
        "b_offsets": grid_init.reshape(-1),
        "w_attn": jnp.zeros((d_model, hlp), jnp.float32),
        "b_attn": jnp.zeros((hlp,), jnp.float32),
        "w_value": jax.random.uniform(kv, (d_model, d_model), jnp.float32,
                                      -bound, bound),
        "b_value": jnp.zeros((d_model,), jnp.float32),
        "w_out": jax.random.uniform(ko, (d_model, d_model), jnp.float32,
                                    -bound, bound),
        "b_out": jnp.zeros((d_model,), jnp.float32),
    }


# ----------------------------------------------------------------------------
# Demo
# ----------------------------------------------------------------------------
if __name__ == "__main__":
    key = jax.random.PRNGKey(0)
    d_model, n_heads, n_levels, n_points = 32, 4, 2, 2
    N, len_q = 2, 256
    spatial = [(8, 8), (4, 4)]
    len_in = sum(h * w for h, w in spatial)                  # 80

    input_spatial_shapes = jnp.array(spatial, jnp.int32)
    starts = [0]
    for h, w in spatial[:-1]:
        starts.append(starts[-1] + h * w)
    input_level_start_index = jnp.array(starts, jnp.int32)

    k1, k2, k3, k4 = jax.random.split(key, 4)
    query = jax.random.normal(k1, (N, len_q, d_model), jnp.float32)
    input_flatten = jax.random.normal(k2, (N, len_in, d_model), jnp.float32)
    reference_points = jax.random.uniform(k3, (N, len_q, n_levels, 2), jnp.float32)
    params = init_params(k4, d_model, n_heads, n_levels, n_points)

    out, samp_loc = ms_deform_offset_attn_forward(
        params, query, reference_points, input_flatten,
        input_spatial_shapes, input_level_start_index,
        n_heads=n_heads, n_levels=n_levels, n_points=n_points)
    jax.block_until_ready((out, samp_loc))

    assert out.shape == (N, len_q, d_model)
    assert samp_loc.shape == (N, len_q, n_heads, n_levels, n_points, 2)
    assert bool(jnp.all(jnp.isfinite(out)))
    print("KERNEL_OK")
</pallas_src>

<mosaic_0001>
module attributes {stable_mosaic.version = 11 : i64} {
  func.func @_linear_kernel(%arg0: i32, %arg1: memref<128x32xbf16, #tpu.memory_space<vmem>>, %arg2: memref<32x32xbf16, #tpu.memory_space<vmem>>, %arg3: memref<1x32xf32, #tpu.memory_space<vmem>>, %arg4: memref<128x32xf32, #tpu.memory_space<vmem>>) attributes {dimension_semantics = [#tpu.dimension_semantics<parallel>], iteration_bounds = array<i64: 2>, scalar_prefetch = 0 : i64, scratch_operands = 0 : i64, tpu.core_type = #tpu.core_type<tc>, window_params = [{transform_indices = @transform_0, window_bounds = array<i64: 128, 32>}, {pipeline_mode = #tpu.pipeline_mode<synchronous>, transform_indices = @transform_1, window_bounds = array<i64: 32, 32>}, {pipeline_mode = #tpu.pipeline_mode<synchronous>, transform_indices = @transform_2, window_bounds = array<i64: 1, 32>}, {transform_indices = @transform_3, window_bounds = array<i64: 128, 32>}]} {
    %c0 = arith.constant 0 : index
    %c0_0 = arith.constant 0 : index
    %0 = vector.load %arg1[%c0, %c0_0] : memref<128x32xbf16, #tpu.memory_space<vmem>>, vector<128x32xbf16>
    %c0_1 = arith.constant 0 : index
    %c0_2 = arith.constant 0 : index
    %1 = vector.load %arg2[%c0_1, %c0_2] : memref<32x32xbf16, #tpu.memory_space<vmem>>, vector<32x32xbf16>
    %cst = arith.constant dense<0.000000e+00> : vector<128x32xf32>
    %2 = tpu.matmul %0, %1, %cst {dimension_numbers = #tpu.dot_dimension_numbers<[1], [0], [0], [1], [0, 0, 1, 1], [], []>} : vector<128x32xbf16>, vector<32x32xbf16>, vector<128x32xf32> -> vector<128x32xf32>
    %c0_3 = arith.constant 0 : index
    %c0_4 = arith.constant 0 : index
    %3 = vector.load %arg3[%c0_3, %c0_4] : memref<1x32xf32, #tpu.memory_space<vmem>>, vector<1x32xf32>
    %4 = vector.broadcast %3 : vector<1x32xf32> to vector<128x32xf32>
    %5 = arith.addf %2, %4 : vector<128x32xf32>
    %c0_5 = arith.constant 0 : index
    %c0_6 = arith.constant 0 : index
    %6 = vector.load %arg4[%c0_5, %c0_6] : memref<128x32xf32, #tpu.memory_space<vmem>>, vector<128x32xf32>
    tpu.vector_store %arg4[%c0_5, %c0_6], %5 {strides = array<i32>} : memref<128x32xf32, #tpu.memory_space<vmem>>, vector<128x32xf32>,
    return
  }
  func.func @transform_0(%arg0: i32) -> (i32, i32) {
    %c0_i32 = arith.constant 0 : i32
    %c0_i32_0 = arith.constant 0 : i32
    return %arg0, %c0_i32 : i32, i32
  }
  func.func @transform_1(%arg0: i32) -> (i32, i32) {
    %c0_i32 = arith.constant 0 : i32
    %c0_i32_0 = arith.constant 0 : i32
    %c0_i32_1 = arith.constant 0 : i32
    return %c0_i32, %c0_i32_0 : i32, i32
  }
  func.func @transform_2(%arg0: i32) -> (i32, i32) {
    %c0_i32 = arith.constant 0 : i32
    %c0_i32_0 = arith.constant 0 : i32
    %c0_i32_1 = arith.constant 0 : i32
    return %c0_i32, %c0_i32_0 : i32, i32
  }
  func.func @transform_3(%arg0: i32) -> (i32, i32) {
    %c0_i32 = arith.constant 0 : i32
    %c0_i32_0 = arith.constant 0 : i32
    return %arg0, %c0_i32 : i32, i32
  }
}

</mosaic_0001>

<bundles_post_ra>
// kernel: tpu_custom_call.1
= control target key start
LH: loop header
LB: loop body
LE: loop exit
PB: predicated region body
PF: predicated region fallthrough
CT: control target
= control target key end

     0   :  { %s558_s12 = smov 0   ;;  %s626_s0 = inlined_call_operand.vmem [shape: bf16[256,32], index: 0, kind: input, shape index: {}]   ;;  %s627_s1 = inlined_call_operand.vmem [shape: bf16[32,32], index: 1, kind: input, shape index: {}]   ;;  %s628_s2 = inlined_call_operand.vmem [shape: f32[1,32], index: 2, kind: input, shape index: {}]   ;;  %s629_s3 = inlined_call_operand.vmem [shape: f32[256,32], index: 3, kind: output, shape index: {}]  }
   0x1 LB: > { %s448_s13 = sadd.s32 4294967295, %s536_s12   ;;  %p452_p0 = scmp.ge.s32.totalorder %s536_s12, 1  ;;  %s536_s12 = sphi %s558_s12, %s13_s12  }
   0x2   : > { %p138_p1 = scmp.lt.s32.totalorder %s536_s12, 3 }
   0x4   : > { %p139_p2 = pnand %p452_p0, %p138_p1 }
   0x5   : > { %v520_v0 = vld [vmem:[%s627_s1] sm:$0xff] (!%p139_p2)   ;;  %s453_s16 = sshll.u32 (!%p139_p2), %s448_s13, 4  ;;  %v521_v1 = vld [vmem:[%s627_s1 + $0x8] sm:$0xff] (!%p139_p2)   ;;  %vm254_vm0 = vcmask (!%p139_p2), 261120  }
   0x6   : > { %142 = sbr.rel (%p139_p2) target bundleno = 245 (0xf5), region = 32  ;;  %p163_p3 = scmp.lt.s32.totalorder (!%p139_p2), %s453_s16, 31  ;;  %488 = vmatprep.subr.bf16.mxu0 (!%p139_p2), %v520_v0  ;;  %508 = vmatprep.subr.bf16.mxu1 (!%p139_p2), %v520_v0  ;;  %v457_v10 = vld [vmem:[%s628_s2] ss:$0 sm:$0xff] (!%p139_p2) }
   0x7   : > { %489 = vmatpush3.bf16.msra.mxu0 (!%p139_p2), %v520_v0  ;;  %510 = vmatpush3.bf16.msra.mxu1 (!%p139_p2), %v520_v0 }
   0x8   : > { %490 = vmatprep.subr.bf16.mxu0 (!%p139_p2), %v521_v1  ;;  %509 = vmatprep.subr.bf16.mxu1 (!%p139_p2), %v521_v1 }
   0xb   : > { %491 = vmatpush3.bf16.msra.mxu0 (!%p139_p2), %v521_v1  ;;  %511 = vmatpush3.bf16.msra.mxu1 (!%p139_p2), %v521_v1 }
   0xd   : > { %s631_s16 = smov (!%p163_p3, %s453_s16), 31 }
   0xe   : > { %s454_s19 = sshll.u32 %s631_s16, 2  ;;  %s456_s23 = sshll.u32 %s631_s16, 3 }
   0xf   : > { %s166_s22 = scalar_lea.vmem %s626_s0, %s454_s19  ;;  %s589_s28 = scalar_lea.vmem %s629_s3, %s456_s23 }
  0x10   : > { %v522_v2 = vld [vmem:[%s166_s22] sm:$0xff]   ;;  %v524_v4 = vld [vmem:[%s166_s22 + $0x8] sm:$0xff]   ;;  %v526_v6 = vld [vmem:[%s166_s22 + $0x10] sm:$0xff]  }
  0x11   : > { %v523_v3 = vld [vmem:[%s166_s22 + $0x20] sm:$0xff]   ;;  %492 = vmatprep.mubr.msk.bf16.mxu0 %vm254_vm0, %v522_v2  ;;  %v525_v5 = vld [vmem:[%s166_s22 + $0x28] sm:$0xff]   ;;  %v527_v7 = vld [vmem:[%s166_s22 + $0x30] sm:$0xff]  }
  0x12   : > { %500 = vmatprep.mubr.msk.bf16.mxu1 %vm254_vm0, %v523_v3  ;;  %493 = vmatmul.mubr.msk.bf16.vlgmr.msra.gmra.mrb[0].mxu0 %vm254_vm0, %v524_v4  ;;  %v528_v8 = vld [vmem:[%s166_s22 + $0x18] sm:$0xff]  }
  0x13   : > { %501 = vmatmul.mubr.msk.bf16.vlgmr.msra.gmra.mrb[0].mxu1 %vm254_vm0, %v525_v5  ;;  %496 = vmatprep.mubr.msk.bf16.mxu0 %vm254_vm0, %v526_v6  ;;  %v529_v9 = vld [vmem:[%s166_s22 + $0x38] sm:$0xff]  }
  0x14   : > { %504 = vmatprep.mubr.msk.bf16.mxu1 %vm254_vm0, %v527_v7 }
  0x1a   : > { %497 = vmatmul.mubr.msk.bf16.gmra.mrb[4].mxu0 %vm254_vm0, %v528_v8 }
  0x1b   : > { %505 = vmatmul.mubr.msk.bf16.gmra.mrb[4].mxu1 %vm254_vm0, %v529_v9 }
  0xe5   : > { %v494_v11 = vpop.f32.mrb[0].mxu0 }
  0xe6   : > { %v322_v12 = vadd.f32 %v494_v11, %v457_v10  ;;  %v502_v13 = vpop.f32.mrb[0].mxu1  ;;  %v313_v14 = vpop.f32.mrb[1].mxu0 }
  0xe7   : > { %v354_v15 = vadd.f32 %v502_v13, %v457_v10  ;;  %v314_v16 = vadd.f32 %v457_v10, %v313_v14  ;;  %v345_v17 = vpop.f32.mrb[1].mxu1  ;;  %v495_v18 = vpop.f32.mrb[2].mxu0 }
  0xe8   : > { %378 = vst.msk [vmem:[%s589_s28 + $0x10] sm:$0xff] %vm254_vm0, %v322_v12  ;;  %v346_v19 = vadd.f32 %v457_v10, %v345_v17  ;;  %v325_v20 = vadd.f32 %v495_v18, %v457_v10  ;;  %v503_v21 = vpop.f32.mrb[2].mxu1  ;;  %v316_v22 = vpop.f32.mrb[3].mxu0 }
  0xe9   : > { %386 = vst.msk [vmem:[%s589_s28 + $0x50] sm:$0xff] %vm254_vm0, %v354_v15  ;;  %376 = vst.msk [vmem:[%s589_s28] sm:$0xff] %vm254_vm0, %v314_v16  ;;  %v357_v23 = vadd.f32 %v503_v21, %v457_v10  ;;  %v317_v24 = vadd.f32 %v457_v10, %v316_v22  ;;  %v348_v25 = vpop.f32.mrb[3].mxu1 }
  0xea   : > { %384 = vst.msk [vmem:[%s589_s28 + $0x40] sm:$0xff] %vm254_vm0, %v346_v19  ;;  %379 = vst.msk [vmem:[%s589_s28 + $0x18] sm:$0xff] %vm254_vm0, %v325_v20  ;;  %v349_v26 = vadd.f32 %v457_v10, %v348_v25 }
  0xeb   : > { %387 = vst.msk [vmem:[%s589_s28 + $0x58] sm:$0xff] %vm254_vm0, %v357_v23  ;;  %377 = vst.msk [vmem:[%s589_s28 + $0x8] sm:$0xff] %vm254_vm0, %v317_v24 }
  0xec   : > { %385 = vst.msk [vmem:[%s589_s28 + $0x48] sm:$0xff] %vm254_vm0, %v349_v26 }
  0xed   : > { %v498_v27 = vpop.f32.mrb[4].mxu0 }
  0xee   : > { %v338_v28 = vadd.f32 %v498_v27, %v457_v10  ;;  %v506_v29 = vpop.f32.mrb[4].mxu1  ;;  %v329_v30 = vpop.f32.mrb[5].mxu0 }
  0xef   : > { %v370_v31 = vadd.f32 %v506_v29, %v457_v10  ;;  %v330_v32 = vadd.f32 %v457_v10, %v329_v30  ;;  %v361_v33 = vpop.f32.mrb[5].mxu1  ;;  %v499_v34 = vpop.f32.mrb[6].mxu0 }
  0xf0   : > { %382 = vst.msk [vmem:[%s589_s28 + $0x30] sm:$0xff] %vm254_vm0, %v338_v28  ;;  %v362_v35 = vadd.f32 %v457_v10, %v361_v33  ;;  %v341_v36 = vadd.f32 %v499_v34, %v457_v10  ;;  %v507_v37 = vpop.f32.mrb[6].mxu1  ;;  %v332_v38 = vpop.f32.mrb[7].mxu0 }
  0xf1   : > { %390 = vst.msk [vmem:[%s589_s28 + $0x70] sm:$0xff] %vm254_vm0, %v370_v31  ;;  %380 = vst.msk [vmem:[%s589_s28 + $0x20] sm:$0xff] %vm254_vm0, %v330_v32  ;;  %v373_v39 = vadd.f32 %v507_v37, %v457_v10  ;;  %v333_v40 = vadd.f32 %v457_v10, %v332_v38  ;;  %v364_v41 = vpop.f32.mrb[7].mxu1 }
  0xf2   : > { %388 = vst.msk [vmem:[%s589_s28 + $0x60] sm:$0xff] %vm254_vm0, %v362_v35  ;;  %383 = vst.msk [vmem:[%s589_s28 + $0x38] sm:$0xff] %vm254_vm0, %v341_v36  ;;  %v365_v42 = vadd.f32 %v457_v10, %v364_v41 }
  0xf3   : > { %391 = vst.msk [vmem:[%s589_s28 + $0x78] sm:$0xff] %vm254_vm0, %v373_v39  ;;  %381 = vst.msk [vmem:[%s589_s28 + $0x28] sm:$0xff] %vm254_vm0, %v333_v40 }
  0xf4   : > { %389 = vst.msk [vmem:[%s589_s28 + $0x68] sm:$0xff] %vm254_vm0, %v365_v42 }
  0xf5 PF: > { %s13_s12 = sadd.s32 1, %s536_s12  }
  0xf6   : > { %p10_p4 = scmp.ge.s32.totalorder %s13_s12, 4  }
  0xf8   :  { %12 = sbr.rel (!%p10_p4) target bundleno = 1 (0x1), region = 62 }

</bundles_post_ra>
